<compile_context>
chip_gen: v5e
topology: v5e:2x2
jax: 0.10.0
libtpu: 0.0.40
codegen_flags: <defaults>
</compile_context>

<pallas_src>
import functools

import jax
import jax.numpy as jnp
import numpy as np
from jax import lax
from jax.experimental import pallas as pl
from jax.experimental.pallas import tpu as pltpu


def p2d_kernel(wv_ref, wh_ref, x_ref, o_ref, *, width):
    # wv_ref : VMEM (C, 2C) f32   [A | B];  A/B = vertical taps at h-1 / h+1.
    # wh_ref : VMEM (2, C)  f32   [P ; Q];  P/Q = horizontal taps at w-1 / w+1.
    # x_ref  : VMEM (1, C, HW)    one image, rows flattened onto the lane axis.
    # o_ref  : VMEM (1, 1, HW)    single-output-channel result.
    _, C, HW = x_ref.shape
    W = width

    x = x_ref[0]                                          # (C, HW) f32

    # Vertically shifted slabs (padding=(1,0)): shifting the flattened h*W+w
    # axis by +-W yields x[c, h-1, w] / x[c, h+1, w]; the zero block doubles
    # as the top/bottom zero padding.  Pure in-register lane shifts.
    zrow = jnp.zeros((C, W), x.dtype)
    xu = jnp.concatenate([zrow, x[:, :HW - W]], axis=1)   # xu[c, i] = x[c, i-W]
    xd = jnp.concatenate([x[:, W:], zrow], axis=1)        # xd[c, i] = x[c, i+W]

    # p2d_v + ReLU as one channel contraction:
    #   v[o] = relu( sum_c A[o,c]*xu[c] + B[o,c]*xd[c] )
    xs = jnp.concatenate([xu, xd], axis=0)                # (2C, HW)
    v = jnp.maximum(
        jnp.dot(wv_ref[...], xs, preferred_element_type=jnp.float32),
        0.0)                                              # (C, HW)

    # p2d_h: contract over channels first (one (2,C)x(C,HW) dot), then apply
    # the +-1 w-shift with zeroing at row boundaries (padding=(0,1)).
    tu = jnp.dot(wh_ref[...], v, preferred_element_type=jnp.float32)  # (2, HW)
    t = tu[0:1]                                           # P . v
    u = tu[1:2]                                           # Q . v

    zone = jnp.zeros((1, 1), tu.dtype)
    tl = jnp.concatenate([zone, t[:, :HW - 1]], axis=1)   # t[i-1]
    ur = jnp.concatenate([u[:, 1:], zone], axis=1)        # u[i+1]

    col = lax.broadcasted_iota(jnp.int32, (1, HW), 1) % W
    out = (jnp.where(col != 0, tl, 0.0)
           + jnp.where(col != W - 1, ur, 0.0))            # (1, HW)

    o_ref[0] = out.astype(o_ref.dtype)


def p2d_forward(x_nchw, wv, wh):
    """x: (N,C,H,W); wv: (C,C,3,1) p2d_v weight; wh: (1,C,1,3) p2d_h weight."""
    N, C, H, W = x_nchw.shape
    HW = H * W

    # p2d tap transform on the tiny weights (exactly what the PyTorch pdc
    # 'p2d' func does before F.conv2d): [k0,k1,k2] -> [k0-k1, 0, k2-k1].
    A = wv[:, :, 0, 0] - wv[:, :, 1, 0]                   # (C, C)  h-1 tap
    B = wv[:, :, 2, 0] - wv[:, :, 1, 0]                   # (C, C)  h+1 tap
    P = wh[0, :, 0, 0] - wh[0, :, 0, 1]                   # (C,)    w-1 tap
    Q = wh[0, :, 0, 2] - wh[0, :, 0, 1]                   # (C,)    w+1 tap
    wv_packed = jnp.concatenate([A, B], axis=1).astype(jnp.float32)   # (C, 2C)
    wh_packed = jnp.stack([P, Q], axis=0).astype(jnp.float32)         # (2, C)

    # Contiguous (metadata-only) reshape: rows flattened onto the lane axis.
    x_flat = x_nchw.reshape(N, C, HW).astype(jnp.float32)

    out = pl.pallas_call(
        functools.partial(p2d_kernel, width=W),
        out_shape=jax.ShapeDtypeStruct((N, 1, HW), jnp.float32),
        grid=(N,),
        in_specs=[
            pl.BlockSpec((C, 2 * C), lambda n: (0, 0)),        # packed p2d_v taps
            pl.BlockSpec((2, C), lambda n: (0, 0)),            # packed p2d_h taps
            pl.BlockSpec((1, C, HW), lambda n: (n, 0, 0)),     # one image
        ],
        out_specs=pl.BlockSpec((1, 1, HW), lambda n: (n, 0, 0)),
        compiler_params=pltpu.CompilerParams(
            dimension_semantics=("parallel",)),
    )(wv_packed, wh_packed, x_flat)

    return out.reshape(N, 1, H, W)                        # metadata-only reshape


def ref_forward(x, wv, wh):
    """Pure-JAX reference mirroring the PyTorch p2d module (NCHW)."""
    C = x.shape[1]
    wv_f = wv.reshape(C, C, 3)
    wv_t = jnp.stack([wv_f[:, :, 0] - wv_f[:, :, 1],
                      jnp.zeros_like(wv_f[:, :, 1]),
                      wv_f[:, :, 2] - wv_f[:, :, 1]], axis=-1).reshape(C, C, 3, 1)
    wh_f = wh.reshape(1, C, 3)
    wh_t = jnp.stack([wh_f[:, :, 0] - wh_f[:, :, 1],
                      jnp.zeros_like(wh_f[:, :, 1]),
                      wh_f[:, :, 2] - wh_f[:, :, 1]], axis=-1).reshape(1, C, 1, 3)

    v = lax.conv_general_dilated(x, wv_t, (1, 1), [(1, 1), (0, 0)],
                                 dimension_numbers=("NCHW", "OIHW", "NCHW"),
                                 precision=lax.Precision.HIGHEST)
    v = jnp.maximum(v, 0.0)
    y = lax.conv_general_dilated(v, wh_t, (1, 1), [(0, 0), (1, 1)],
                                 dimension_numbers=("NCHW", "OIHW", "NCHW"),
                                 precision=lax.Precision.HIGHEST)
    return y


if __name__ == "__main__":
    N, C, H, W = 2, 4, 16, 16                       # p2d(channel=4), 16x16 images

    key = jax.random.PRNGKey(0)
    k1, k2, k3 = jax.random.split(key, 3)
    x = jax.random.normal(k1, (N, C, H, W), jnp.float32)
    wv = jax.random.normal(k2, (C, C, 3, 1), jnp.float32) * 0.5   # p2d_v.weight
    wh = jax.random.normal(k3, (1, C, 1, 3), jnp.float32) * 0.5   # p2d_h.weight

    out = jax.block_until_ready(p2d_forward(x, wv, wh))
    ref = jax.block_until_ready(ref_forward(x, wv, wh))

    assert out.shape == (N, 1, H, W), out.shape
    np.testing.assert_allclose(np.asarray(out), np.asarray(ref),
                               rtol=1e-4, atol=1e-4)
    print("KERNEL_OK")
</pallas_src>

<mosaic_0001>
module attributes {stable_mosaic.version = 11 : i64} {
  func.func @p2d_kernel(%arg0: i32, %arg1: memref<4x8xf32, #tpu.memory_space<vmem>>, %arg2: memref<2x4xf32, #tpu.memory_space<vmem>>, %arg3: memref<1x4x256xf32, #tpu.memory_space<vmem>>, %arg4: memref<1x1x256xf32, #tpu.memory_space<vmem>>) attributes {dimension_semantics = [#tpu.dimension_semantics<parallel>], iteration_bounds = array<i64: 2>, scalar_prefetch = 0 : i64, scratch_operands = 0 : i64, tpu.core_type = #tpu.core_type<tc>, window_params = [{pipeline_mode = #tpu.pipeline_mode<synchronous>, transform_indices = @transform_0, window_bounds = array<i64: 4, 8>}, {pipeline_mode = #tpu.pipeline_mode<synchronous>, transform_indices = @transform_1, window_bounds = array<i64: 2, 4>}, {transform_indices = @transform_2, window_bounds = array<i64: 1, 4, 256>}, {transform_indices = @transform_3, window_bounds = array<i64: 1, 1, 256>}]} {
    %c0 = arith.constant 0 : index
    %c0_0 = arith.constant 0 : index
    %c0_1 = arith.constant 0 : index
    %0 = vector.load %arg3[%c0, %c0_0, %c0_1] : memref<1x4x256xf32, #tpu.memory_space<vmem>>, vector<1x4x256xf32>
    %1 = vector.shape_cast %0 : vector<1x4x256xf32> to vector<4x256xf32>
    %cst = arith.constant 0.000000e+00 : f32
    %2 = vector.broadcast %cst : f32 to vector<4x16xf32>
    %3 = vector.extract_strided_slice %1 {offsets = [0, 0], sizes = [4, 240], strides = [1, 1]} : vector<4x256xf32> to vector<4x240xf32>
    %4 = tpu.concatenate %2, %3 in 1 : vector<4x16xf32>, vector<4x240xf32> -> vector<4x256xf32>
    %5 = vector.extract_strided_slice %1 {offsets = [0, 16], sizes = [4, 240], strides = [1, 1]} : vector<4x256xf32> to vector<4x240xf32>
    %6 = tpu.concatenate %5, %2 in 1 : vector<4x240xf32>, vector<4x16xf32> -> vector<4x256xf32>
    %7 = tpu.concatenate %4, %6 in 0 : vector<4x256xf32>, vector<4x256xf32> -> vector<8x256xf32>
    %c0_2 = arith.constant 0 : index
    %c0_3 = arith.constant 0 : index
    %8 = vector.load %arg1[%c0_2, %c0_3] : memref<4x8xf32, #tpu.memory_space<vmem>>, vector<4x8xf32>
    %cst_4 = arith.constant dense<0.000000e+00> : vector<4x256xf32>
    %9 = tpu.matmul %8, %7, %cst_4 {dimension_numbers = #tpu.dot_dimension_numbers<[1], [0], [0], [1], [0, 0, 1, 1], [], []>} : vector<4x8xf32>, vector<8x256xf32>, vector<4x256xf32> -> vector<4x256xf32>
    %cst_5 = arith.constant 0.000000e+00 : f32
    %10 = vector.broadcast %cst_5 : f32 to vector<4x256xf32>
    %11 = arith.maximumf %9, %10 : vector<4x256xf32>
    %c0_6 = arith.constant 0 : index
    %c0_7 = arith.constant 0 : index
    %12 = vector.load %arg2[%c0_6, %c0_7] : memref<2x4xf32, #tpu.memory_space<vmem>>, vector<2x4xf32>
    %cst_8 = arith.constant dense<0.000000e+00> : vector<2x256xf32>
    %13 = tpu.matmul %12, %11, %cst_8 {dimension_numbers = #tpu.dot_dimension_numbers<[1], [0], [0], [1], [0, 0, 1, 1], [], []>} : vector<2x4xf32>, vector<4x256xf32>, vector<2x256xf32> -> vector<2x256xf32>
    %14 = vector.extract_strided_slice %13 {offsets = [0, 0], sizes = [1, 256], strides = [1, 1]} : vector<2x256xf32> to vector<1x256xf32>
    %15 = vector.extract_strided_slice %13 {offsets = [1, 0], sizes = [1, 256], strides = [1, 1]} : vector<2x256xf32> to vector<1x256xf32>
    %cst_9 = arith.constant 0.000000e+00 : f32
    %16 = vector.broadcast %cst_9 : f32 to vector<1x1xf32>
    %17 = vector.extract_strided_slice %14 {offsets = [0, 0], sizes = [1, 255], strides = [1, 1]} : vector<1x256xf32> to vector<1x255xf32>
    %18 = tpu.concatenate %16, %17 in 1 : vector<1x1xf32>, vector<1x255xf32> -> vector<1x256xf32>
    %19 = vector.extract_strided_slice %15 {offsets = [0, 1], sizes = [1, 255], strides = [1, 1]} : vector<1x256xf32> to vector<1x255xf32>
    %20 = tpu.concatenate %19, %16 in 1 : vector<1x255xf32>, vector<1x1xf32> -> vector<1x256xf32>
    %21 = tpu.iota {dimensions = array<i32: 1>} : vector<1x256xi32>
    %c16_i32 = arith.constant 16 : i32
    %c0_i32 = arith.constant 0 : i32
    %22 = arith.cmpi eq, %c16_i32, %c0_i32 : i32
    %c1_i32 = arith.constant 1 : i32
    %23 = arith.select %22, %c1_i32, %c16_i32 : i32
    %24 = vector.broadcast %23 : i32 to vector<1x256xi32>
    %25 = arith.remsi %21, %24 : vector<1x256xi32>
    %c0_i32_10 = arith.constant 0 : i32
    %26 = vector.broadcast %c0_i32_10 : i32 to vector<1x256xi32>
    %27 = arith.cmpi ne, %25, %26 : vector<1x256xi32>
    %c0_i32_11 = arith.constant 0 : i32
    %28 = vector.broadcast %c0_i32_11 : i32 to vector<1x256xi32>
    %29 = arith.cmpi slt, %25, %28 : vector<1x256xi32>
    %c0_i32_12 = arith.constant 0 : i32
    %30 = arith.cmpi slt, %23, %c0_i32_12 : i32
    %31 = vector.broadcast %30 : i1 to vector<1x256xi1>
    %32 = vector.broadcast %31 : vector<1x256xi1> to vector<1x256xi1>
    %33 = arith.xori %29, %32 : vector<1x256xi1>
    %34 = arith.andi %33, %27 : vector<1x256xi1>
    %35 = vector.broadcast %23 : i32 to vector<1x256xi32>
    %36 = arith.addi %25, %35 : vector<1x256xi32>
    %37 = arith.select %34, %36, %25 : vector<1x256xi1>, vector<1x256xi32>
    %c0_i32_13 = arith.constant 0 : i32
    %38 = vector.broadcast %c0_i32_13 : i32 to vector<1x256xi32>
    %39 = arith.cmpi ne, %37, %38 : vector<1x256xi32>
    %cst_14 = arith.constant 0.000000e+00 : f32
    %40 = vector.broadcast %cst_14 : f32 to vector<1x256xf32>
    %41 = arith.select %39, %18, %40 : vector<1x256xi1>, vector<1x256xf32>
    %c15_i32 = arith.constant 15 : i32
    %42 = vector.broadcast %c15_i32 : i32 to vector<1x256xi32>
    %43 = arith.cmpi ne, %37, %42 : vector<1x256xi32>
    %cst_15 = arith.constant 0.000000e+00 : f32
    %44 = vector.broadcast %cst_15 : f32 to vector<1x256xf32>
    %45 = arith.select %43, %20, %44 : vector<1x256xi1>, vector<1x256xf32>
    %46 = arith.addf %41, %45 : vector<1x256xf32>
    %c0_16 = arith.constant 0 : index
    %c0_17 = arith.constant 0 : index
    %c0_18 = arith.constant 0 : index
    %47 = vector.load %arg4[%c0_16, %c0_17, %c0_18] : memref<1x1x256xf32, #tpu.memory_space<vmem>>, vector<1x1x256xf32>
    %48 = vector.shape_cast %47 : vector<1x1x256xf32> to vector<1x256xf32>
    %49 = vector.shape_cast %46 : vector<1x256xf32> to vector<1x1x256xf32>
    tpu.vector_store %arg4[%c0_16, %c0_17, %c0_18], %49 {strides = array<i32>} : memref<1x1x256xf32, #tpu.memory_space<vmem>>, vector<1x1x256xf32>,
    return
  }
  func.func @transform_0(%arg0: i32) -> (i32, i32) {
    %c0_i32 = arith.constant 0 : i32
    %c0_i32_0 = arith.constant 0 : i32
    %c0_i32_1 = arith.constant 0 : i32
    return %c0_i32, %c0_i32_0 : i32, i32
  }
  func.func @transform_1(%arg0: i32) -> (i32, i32) {
    %c0_i32 = arith.constant 0 : i32
    %c0_i32_0 = arith.constant 0 : i32
    %c0_i32_1 = arith.constant 0 : i32
    return %c0_i32, %c0_i32_0 : i32, i32
  }
  func.func @transform_2(%arg0: i32) -> (i32, i32, i32) {
    %c0_i32 = arith.constant 0 : i32
    %c0_i32_0 = arith.constant 0 : i32
    %c0_i32_1 = arith.constant 0 : i32
    return %arg0, %c0_i32, %c0_i32_0 : i32, i32, i32
  }
  func.func @transform_3(%arg0: i32) -> (i32, i32, i32) {
    %c0_i32 = arith.constant 0 : i32
    %c0_i32_0 = arith.constant 0 : i32
    %c0_i32_1 = arith.constant 0 : i32
    return %arg0, %c0_i32, %c0_i32_0 : i32, i32, i32
  }
}

</mosaic_0001>

<bundles_post_ra>
// kernel: tpu_custom_call.1
= control target key start
LH: loop header
LB: loop body
LE: loop exit
PB: predicated region body
PF: predicated region fallthrough
CT: control target
= control target key end

     0   :  { %8 = vsyncpa [#allocation3], 0  ;;  %s986_s0 = inlined_call_operand.hbm [shape: f32[4,8], index: 0, kind: input, shape index: {}]   ;;  %s987_s1 = inlined_call_operand.hbm [shape: f32[2,4], index: 1, kind: input, shape index: {}]   ;;  %s988_s2 = inlined_call_operand.hbm [shape: f32[2,4,256], index: 2, kind: input, shape index: {}]   ;;  %s989_s3 = inlined_call_operand.hbm [shape: f32[2,1,256], index: 3, kind: output, shape index: {}]  }
   0x1   :  { %9 = vsyncpa [#allocation6], 0 }
   0x2   :  { %10 = vsyncpa [#allocation4], 0 }
   0x3   :  { %12 = vsyncpa [#allocation4 + $0x1], 0  ;;  %s823_s12 = smov 0   ;;  %s825_s13 = smov 0  }
   0x4   :  { %s827_s14 = smov 0   ;;  %s829_s15 = smov 0  }
   0x5 LB: > { %s844_s16 = sadd.s32 4294967295, %s795_s15   ;;  %s526_s17 = sadd.s32 4294967294, %s795_s15   ;;  %s795_s15 = sphi %s829_s15, %s1003_s15   ;;  %s791_s14 = sphi %s827_s14, %s1002_s14   ;;  %s787_s13 = sphi %s825_s13, %s1001_s13   ;;  %s783_s12 = sphi %s823_s12, %s1000_s12  }
   0x6   : > { %p80_p0 = scmp.ne.s32.totalorder %s787_s13, %s783_s12  ;;  %p81_p1 = scmp.eq.s32.totalorder %s844_s16, 0 }
   0x7   : > { %p104_p2 = scmp.eq.s32.totalorder %s844_s16, 1  ;;  %p110_p3 = scmp.eq.s32.totalorder %s526_s17, 1 }
   0x8   : > { %p853_p4 = por %p81_p1, %p80_p0  ;;  %p527_p5 = scmp.ge.s32.totalorder %s795_s15, 1 }
   0x9   : > { %p858_p6 = por %p110_p3, %p80_p0  ;;  %p117_p7 = scmp.lt.s32.totalorder %s795_s15, 3 }
   0xa   : > { %s129_s22 = sshll.u32 %s986_s0, 4  ;;  %s797_s24 = smov [#allocation2]   ;;  %s130_s22 = int_to_ptr.hbm [resolvable:$true] %s129_s22 }
   0xb   : > { %p866_p8 = pnand %p527_p5, %p117_p7  ;;  %s131_s25 = sshll.u32 %s797_s24, 4  ;;  %s132_s25 = int_to_ptr.vmem [resolvable:$true] %s131_s25 }
   0xc   : > { %s141_s28 = sshll.u32 %s987_s1, 4  ;;  %s798_s29 = smov [#allocation5]   ;;  %s142_s28 = int_to_ptr.hbm [resolvable:$true] %s141_s28 }
   0xd   : > { %p562_p10 = pneg %p866_p8  ;;  %s143_s30 = sshll.u32 %s798_s29, 4  ;;  %s144_s30 = int_to_ptr.vmem [resolvable:$true] %s143_s30 }
   0xe   : > { %s879_s4 = sadd.s32 1, %s795_s15   ;;  %s67_s5 = sadd.s32 1, %s791_s14 }
   0xf   : > { %p563_p11 = pnand %p562_p10, %p81_p1  ;;  %s64_s6 = ssub.s32 %s795_s15, %s879_s4 }
  0x10   : > { %p74_p12 = scmp.ne.s32.totalorder %s791_s14, %s787_s13  ;;  %p65_p13 = scmp.eq.s32.totalorder %s64_s6, 0 }
  0x11   : > { %565 = dma.hbm_to_vmem [thread:$0]  (!%p563_p11), %s130_s22, 64, %s132_s25, [#allocation3]  }
  0x12   : > { %568 = dma.hbm_to_vmem [thread:$0]  (!%p563_p11), %s142_s28, 32, %s144_s30, [#allocation6]  }
  0x13   : > { %p75_p0 = scmp.eq.s32.totalorder %s795_s15, 0  ;;  %p889_p3 = por %p104_p2, %p74_p12 }
  0x14   : > { %s894_s8 = scalar_select %p65_p13, %s791_s14, %s67_s5  }
  0x15   : > { %p76_p5 = por %p75_p0, %p74_p12  ;;  %p579_p7 = scmp.lt.s32.totalorder %s795_s15, 2 }
  0x16   : > { %s154_s9 = sand.u32 1, %s795_s15   ;;  %s156_s10 = sand.u32 1, %s791_s14  }
  0x17   : > { %s531_s11 = sshll.u32 %s156_s10, 3  ;;  %s549_s17 = sshll.u32 %s795_s15, 3 }
  0x18   : > { %s163_s22 = scalar_lea.hbm %s988_s2, %s549_s17  ;;  %s158_s25 = scalar_lea.vmem [#allocation7], %s531_s11 }
  0x19   : > { %s165_s24 = sshll.u32 %s163_s22, 4  ;;  %s167_s26 = sshll.u32 %s158_s25, 4  ;;  %s166_s24 = int_to_ptr.hbm [resolvable:$true] %s165_s24  ;;  %s168_s26 = int_to_ptr.vmem [resolvable:$true] %s167_s26 }
  0x1a   : > { %p903_p2 = pnand %p579_p7, %p76_p5  ;;  %s155_s28 = scalar_lea.sflag [#allocation3], %s154_s9 }
  0x1b   : > { %s691_s29 = sshra.s32 %s166_s24, 4  ;;  %s698_s10 = scalar_lea.hbm %s988_s2, 16  ;;  %s692_s29 = int_to_ptr.hbm [resolvable:$true] %s691_s29 }
  0x1c   : > { %s693_s30 = scalar_lea.hbm %s692_s29, 8  ;;  %p695_p11 = pneg %p903_p2 }
  0x1d   : > { %p694_p10 = scmp.ne.s32.totalorder %s692_s29, %s693_s30  ;;  %p699_p0 = scmp.lt.s32.totalorder %s692_s29, %s988_s2 }
  0x1e   : > { %p700_p5 = scmp.lt.s32.totalorder %s698_s10, %s693_s30 }
  0x1f   : > { %p696_p12 = pnand %p695_p11, %p694_p10 }
  0x20   : > { %p701_p7 = por %p700_p5, %p699_p0 }
  0x21   : > { %p697_p13 = pneg %p696_p12 }
  0x23   : > { %p702_p9 = pnand %p701_p7, %p697_p13 }
  0x25   : > { %705 = shalt.err (!%p702_p9)
}
  0x26   : > { %572 = dma.hbm_to_vmem [thread:$0]  (!%p903_p2), %s166_s24, 128, %s168_s26, %s155_s28  }
  0x27   : > { %176 = sbr.rel (%p866_p8) target bundleno = 592 (0x250), region = 32 }
  0x2c   : > { %766 = dma.done.wait (%p81_p1), [#allocation3], 64  }
  0x2d   : > { %768 = vsyncadd (%p81_p1), [#allocation3], 4294967232 }
  0x2e   : > { %770 = dma.done.wait (%p81_p1), [#allocation6], 32  }
  0x2f   : > { %772 = vsyncadd (%p81_p1), [#allocation6], 4294967264  ;;  %s188_s9 = sand.u32 1, %s844_s16   ;;  %s929_s20 = sand.u32 1, %s787_s13  }
  0x30   : > { %s537_s23 = sshll.u32 %s929_s20, 3  ;;  %s189_s21 = scalar_lea.sflag [#allocation3], %s188_s9 }
  0x31   : > { %s192_s22 = scalar_lea.vmem [#allocation7], %s537_s23 }
  0x32   : > { %774 = dma.done.wait (%p853_p4), %s189_s21, 128  }
  0x33   : > { %776 = vsyncadd (%p853_p4), %s189_s21, 4294967168  ;;  %v216_v0 = vld [vmem:[%s192_s22] sm:$0xff]  ;;  %s799_s24 = smov 112   ;;  %s800_s25 = smov 16   ;;  %vm237_vm0 = vcmask 916480   ;;  %vm225_vm1 = vcmask 130048   ;;  %v367_v29 = vlaneseq }
  0x34   : > { %218 = vst [vmem:[#allocation1] ss:$2 sm:$0xff] %v216_v0  ;;  %vm246_vm2 = vcmask 1043456   ;;  %v249_v19 = vld [vmem:[#allocation2] sm:$0xf]  ;;  %vm250_vm3 = vcmask 64512  }
  0x35   : > { %v296_v25 = vld [vmem:[#allocation5] sm:$0x3]  ;;  %vm297_vm4 = vcmask 31744   ;;  %s801_s18 = smov 1   ;;  %s802_s26 = smov 127   ;;  %v368_v30 = vand.u32 127, %v367_v29 }
  0x36   : > { %vm362_vm5 = vcmask 1039360   ;;  %s538_s27 = sshll.u32 %s929_s20, 1  ;;  %s546_s28 = sshll.u32 %s844_s16, 1  ;;  %vm353_vm8 = vcmask 7168   ;;  %vm413_vm11 = vcmask 1040384   ;;  %vm418_vm12 = vcmp.lt.s32.totalorder %v367_v29, 256 }
  0x37   : > { %v369_v32 = vadd.s32 128, %v368_v30  ;;  %v374_v35 = vand.u32 15, %v368_v30  ;;  %s432_s5 = scalar_lea.hbm %s989_s3, %s546_s28  ;;  %s215_s16 = scalar_lea.vmem [#allocation8], %s538_s27 }
  0x38   : > { %s434_s6 = sshll.u32 %s215_s16, 4  ;;  %s436_s10 = sshll.u32 %s432_s5, 4  ;;  %s435_s6 = int_to_ptr.vmem [resolvable:$true] %s434_s6  ;;  %s437_s10 = int_to_ptr.hbm [resolvable:$true] %s436_s10 }
  0x39   : > { %v381_v33 = vand.u32 15, %v369_v32  ;;  %vm940_vm7 = vcmp.ne.s32.totalorder %v374_v35, 15  ;;  %vm946_vm9 = vcmp.ne.s32.totalorder %v374_v35, 0  ;;  %s422_s11 = scalar_lea.sflag [#allocation4], %s929_s20  ;;  %s735_s17 = sshra.s32 %s437_s10, 4  ;;  %s736_s17 = int_to_ptr.hbm [resolvable:$true] %s735_s17 }
  0x3a   : > { %s737_s9 = scalar_lea.hbm %s736_s17, 2  ;;  %s741_s22 = scalar_lea.hbm %s989_s3, 4 }
  0x3b   : > { %v219_v1 = vld.sshfl [vmem:[#allocation1] sm:$0xff pattern:$0x75316420]  ;;  %v220_v2 = vld.sshfl [vmem:[#allocation1 + $0x8] sm:$0xff pattern:$0x75316420]  ;;  %p738_p1 = scmp.ne.s32.totalorder %s736_s17, %s737_s9  ;;  %p742_p9 = scmp.lt.s32.totalorder %s736_s17, %s989_s3 }
  0x3c   : > { %230 = vst [vmem:[#allocation1] ss:$2 sm:$0xff] %v216_v0  ;;  %v626_v6 = vpack.i.bf16 %v220_v2, %v219_v1  ;;  %vm399_vm6 = vcmp.ne.s32.totalorder %v381_v33, 15  ;;  %vm395_vm10 = vcmp.ne.s32.totalorder %v381_v33, 0  ;;  %p743_p2 = scmp.lt.s32.totalorder %s741_s22, %s737_s9 }
  0x3d   : > { %p739_p4 = pnand %p738_p1, %p889_p3 }
  0x3e   : > { %p744_p10 = por %p743_p2, %p742_p9 }
  0x3f   : > { %p740_p8 = pneg %p739_p4 }
  0x41   : > { %p745_p11 = pnand %p744_p10, %p740_p8 }
  0x43   : > { %v231_v3 = vld.sshfl [vmem:[#allocation1] sm:$0xff pattern:$0x75316420]  ;;  %v232_v4 = vld.sshfl [vmem:[#allocation1 + $0x8] sm:$0xff pattern:$0x75316420] }
  0x44   : > { %v621_v5 = vpack.i.bf16 %v231_v3, %v232_v4 }
  0x46   : > { %622 = vrot.lane.b32.xlu0 %v621_v5, %s799_s24 }
  0x4e   : > { %627 = vrot.lane.b32.xlu0 %v626_v6, %s800_s25 }
  0xb8   : > { %v623_v7 = vpop.permute.xlu0 %622 }
  0xb9   : > { %v625_v8 = vunpack.i.h.bf16 %v623_v7  ;;  %v624_v9 = vunpack.i.l.bf16 %v623_v7 }
  0xbb   : > { %v240_v10 = vsel %vm237_vm0, %v624_v9, 0.0  ;;  %v238_v11 = vsel %vm237_vm0, %v625_v8, %v624_v9 }
  0xbc   : > { %v243_v15 = vrot.slane %v240_v10, 4  ;;  %v242_v16 = vrot.slane %v238_v11, 4 }
  0xc0   : > { %v628_v12 = vpop.permute.xlu0 %627 }
  0xc1   : > { %v630_v13 = vunpack.i.h.bf16 %v628_v12  ;;  %v629_v14 = vunpack.i.l.bf16 %v628_v12 }
  0xc3   : > { %v229_v17 = vsel %vm225_vm1, 0.0, %v629_v14  ;;  %v226_v18 = vsel %vm225_vm1, %v629_v14, %v630_v13 }
  0xc4   : > { %v247_v20 = vsel %vm246_vm2, %v229_v17, %v242_v16  ;;  %v248_v21 = vsel %vm246_vm2, %v226_v18, %v243_v15 }
  0xc5   : > { %269 = vmatpush.msra.mxu0 %v247_v20  ;;  %289 = vmatpush.msra.mxu1 %v248_v21 }
  0xc6   : > { %540 = vmatmul.msk.f32.vlgmr.msra.gmra.mxu1 %vm250_vm3, %v249_v19  ;;  %539 = vmatmul.msk.f32.vlgmr.msra.gmra.mxu0 %vm250_vm3, %v249_v19 }
 0x143   : > { %v291_v22 = vpop.f32.mrf.mxu1  ;;  %v271_v23 = vpop.f32.mrf.mxu0 }
 0x144   : > { %v295_v24 = vmax.f32 %v291_v22, 0.0  ;;  %v294_v26 = vmax.f32 %v271_v23, 0.0 }
 0x146   : > { %543 = vmatpush.msk.msra.mxu3 %vm246_vm2, %v295_v24  ;;  %541 = vmatpush.msk.msra.mxu2 %vm246_vm2, %v294_v26 }
 0x147   : > { %544 = vmatmul.msk.f32.vlgmr.msra.gmra.mxu3 %vm297_vm4, %v296_v25  ;;  %542 = vmatmul.msk.f32.vlgmr.msra.gmra.mxu2 %vm297_vm4, %v296_v25 }
 0x1ca   : > { %v344_v27 = vpop.f32.mrf.mxu3  ;;  %v324_v28 = vpop.f32.mrf.mxu2 }
 0x1cb   : > { %351 = vrot.lane.b32.xlu2 %v344_v27, %s801_s18  ;;  %360 = vrot.lane.b32.xlu1 %v344_v27, %s802_s26 }
 0x1d3   : > { %358 = vrot.lane.b32.xlu2 %v324_v28, %s802_s26  ;;  %349 = vrot.lane.b32.xlu1 %v324_v28, %s801_s18 }
 0x225   : > { %v352_v31 = vpop.permute.xlu2 %351 }
 0x22d   : > { %v359_v37 = vpop.permute.xlu2 %358 }
 0x23d   : > { %v361_v34 = vpop.permute.xlu1 %360 }
 0x23e   : > { %v366_v36 = vsel %vm362_vm5, %v361_v34, 0.0  ;;  %v363_v39 = vsel %vm362_vm5, %v359_v37, %v361_v34 }
 0x23f   : > { %v401_v40 = vsel %vm399_vm6, %v366_v36, 0.0  ;;  %v400_v42 = vsel %vm940_vm7, %v363_v39, 0.0 }
 0x240   : > { %v405_v44 = vrot.slane %v401_v40, 1  ;;  %v404_v49 = vrot.slane %v400_v42, 1 }
 0x245   : > { %v350_v43 = vpop.permute.xlu1 %349 }
 0x246   : > { %v354_v45 = vsel %vm353_vm8, %v350_v43, %v352_v31  ;;  %v357_v46 = vsel %vm353_vm8, 0.0, %v350_v43 }
 0x247   : > { %v396_v47 = vsel %vm946_vm9, %v357_v46, 0.0  ;;  %v397_v48 = vsel %vm395_vm10, %v354_v45, 0.0 }
 0x248   : > { %v409_v50 = vadd.f32 %v405_v44, %v397_v48  ;;  %v408_v51 = vadd.f32 %v404_v49, %v396_v47 }
 0x24a   : > { %v412_v52 = vrot.slane %v409_v50, 7 }
 0x24c   : > { %v414_v53 = vsel %vm413_vm11, %v408_v51, %v412_v52 }
 0x24d   : > { %420 = vst.msk [vmem:[%s215_s16] sm:$0x3] %vm418_vm12, %v414_v53 }
 0x24e   : > { %748 = shalt.err (!%p745_p11)
}
 0x24f   : > { %560 = dma.vmem_to_hbm [thread:$0]  (%p889_p3), %s435_s6, 32, %s437_s10, %s422_s11  }
 0x250 PF: > { %s448_s20 = sand.u32 1, %s783_s12   ;;  %p999_p12 = scmp.ge.s32.totalorder %s795_s15, 2 }
 0x251   : > { %s449_s18 = scalar_lea.sflag [#allocation4], %s448_s20 }
 0x252   : > { %p574_p13 = pnand %p999_p12, %p858_p6 }
 0x254   : > { %p575_p0 = pneg %p574_p13 }
 0x256   : > { %778 = dma.done.wait (%p575_p0), %s449_s18, 32  }
 0x257   : > { %780 = vsyncadd (%p575_p0), %s449_s18, 4294967264  ;;  %p15_p5 = scmp.ge.s32.totalorder %s879_s4, 4   ;;  %s1000_s12 = smov %s787_s13 }
 0x258   : > { %s1001_s13 = smov %s791_s14  ;;  %s1002_s14 = smov %s894_s8 }
 0x259   : > { %s1003_s15 = smov %s879_s4  ;;  %17 = sbr.rel (!%p15_p5) target bundleno = 5 (0x5), region = 84 }
 0x25e   :  { %455 = vsyncpa [#allocation3], 1 }
 0x25f   :  { %457 = vsyncpa [#allocation3 + $0x1], 1 }
 0x260   :  { %458 = vsyncpa [#allocation6], 1 }
 0x261   :  { %459 = vsyncpa [#allocation4], 1 }
 0x262   :  { %461 = vsyncpa [#allocation4 + $0x1], 1 }

</bundles_post_ra>
